<compile_context>
chip_gen: v5e
topology: v5e:2x2
jax: 0.10.0
libtpu: 0.0.40
codegen_flags: <defaults>
</compile_context>

<pallas_src>
import functools

import jax
import jax.numpy as jnp
from jax.experimental import pallas as pl
from jax.experimental.pallas import tpu as pltpu


def _round_up(x, mult):
    return ((x + mult - 1) // mult) * mult


# ---------------------------------------------------------------------------
# Pallas kernel: one (batch, spatial-tile) block.
#   Fused im2col (shift trick on the flattened padded input) + adaptive conv
#   (weights pre-scaled by attention1) + attention3 spatial-bias epilogue.
# ---------------------------------------------------------------------------
def sicm_kernel(xm_ref, xh_ref, w_ref, w32_ref, w33_ref,
                b31_ref, b32_ref, b33_ref, o_ref, xcat_ref,
                *, k, m, wp, chunk):
    # xm_ref   : (1, n_pad, TILE_P)          bf16  flattened padded-input tile
    # xh_ref   : (1, 1, n_pad, HALO_pad)     bf16  right halo (next tile's head)
    # w_ref    : (1, kk, 2m, n_pad)          bf16  attention1-scaled [W ; W31]
    # w32/w33  : (m, m) f32 ; b31/b32/b33 : (m, 1) f32
    # o_ref    : (1, m, TILE_P)              output tile (lane-dense)
    # xcat_ref : (n_pad, TILE_P + HALO_pad)  bf16  VMEM scratch (tile ++ halo)
    tile_p = o_ref.shape[2]

    # Assemble the contiguous input window (tile + right halo) in VMEM.
    xcat_ref[:, :tile_p] = xm_ref[0]
    xcat_ref[:, tile_p:] = xh_ref[0, 0]

    wk = w_ref[0]          # (kk, 2m, n_pad)  bf16
    w32 = w32_ref[...]
    w33 = w33_ref[...]
    b31 = b31_ref[...]
    b32 = b32_ref[...]
    b33 = b33_ref[...]

    # Register-resident column chunks: the (2m, chunk) f32 accumulator never
    # spills, independent of TILE_P.
    for c0 in range(0, tile_p, chunk):
        acc = jnp.zeros((2 * m, chunk), jnp.float32)
        # Fused im2col: k*k statically shifted lane windows of the input tile,
        # each contracted against its (2m, n_pad) weight slice on the MXU.
        for ki in range(k):
            for kj in range(k):
                s = c0 + ki * wp + kj
                xs = xcat_ref[:, s:s + chunk]                       # (n_pad, chunk)
                acc = acc + jnp.dot(wk[ki * k + kj], xs,
                                    preferred_element_type=jnp.float32)
        y = acc[:m]                                                 # main conv path
        # attention3 bias: kxk conv -> ReLU -> 1x1 -> ReLU -> 1x1 -> sigmoid
        h = jnp.maximum(acc[m:] + b31, 0.0)
        h = jnp.maximum(
            jnp.dot(w32, h, preferred_element_type=jnp.float32) + b32, 0.0)
        h = jnp.dot(w33, h, preferred_element_type=jnp.float32) + b33
        o_ref[0, :, c0:c0 + chunk] = (y + jax.nn.sigmoid(h)).astype(o_ref.dtype)


# ---------------------------------------------------------------------------
# Wrapper: attention1 MLP (tiny, plain JAX) folded into the weights, one
# cheap input pad/flatten pass, Pallas launch, final slice/reshape to NCHW.
# ---------------------------------------------------------------------------
def attention1_weights(params, lms):
    """AdaptiveAvgPool2d(1) -> Conv 1x1 -> ReLU -> Conv 1x1  ==> (b, k*k)."""
    gap = jnp.mean(lms, axis=(2, 3))                                    # (b, n)
    a = jnp.maximum(gap @ params["a1_w1"].T + params["a1_b1"], 0.0)     # (b, kk)
    return a @ params["a1_w2"].T + params["a1_b2"]                      # (b, kk)


def sicm_forward(params, lms, *, k=3, stride=1, padding=0, tile_p=4096,
                 out_dtype=jnp.float32):
    b, n, H, W = lms.shape
    m = params["w"].shape[0]
    kk = k * k
    Hp, Wp = H + 2 * padding, W + 2 * padding
    n_H = (Hp - k) // stride + 1
    n_W = (Wp - k) // stride + 1

    CHUNK = 512
    n_pad = _round_up(n, 16)                       # bf16 sublane packing
    P = Hp * Wp                                    # flattened padded-input grid
    TILE_P = min(_round_up(tile_p, CHUNK), _round_up(P, CHUNK))
    num_tiles = pl.cdiv(P, TILE_P)
    P_pad = num_tiles * TILE_P
    HALO = (k - 1) * Wp + (k - 1)                  # largest patch-window shift
    HALO_pad = _round_up(max(HALO, 1), 128)

    # --- attention1 and fold it into the concatenated conv weights ---------
    atw_kk = attention1_weights(params, lms)                            # (b, kk)
    w_cat = jnp.concatenate([params["w"], params["w31"]], axis=0)       # (2m, n*kk)
    w_cat = jnp.transpose(w_cat.reshape(2 * m, n, kk), (2, 0, 1))       # (kk, 2m, n)
    scale = jnp.concatenate(
        [jnp.broadcast_to(atw_kk[:, :, None, None], (b, kk, m, 1)),
         jnp.ones((b, kk, m, 1), jnp.float32)], axis=2)                 # (b, kk, 2m, 1)
    w_scaled = jnp.pad(w_cat[None] * scale,
                       ((0, 0), (0, 0), (0, 0), (0, n_pad - n))
                       ).astype(jnp.bfloat16)                           # (b,kk,2m,n_pad)

    # --- input: ONE elementwise pass (spatial pad + bf16 + flatten + tail) --
    x = jnp.pad(lms, ((0, 0), (0, n_pad - n),
                      (padding, padding), (padding, padding))).astype(jnp.bfloat16)
    x_main = jnp.pad(x.reshape(b, n_pad, P),
                     ((0, 0), (0, 0), (0, P_pad - P)))                  # (b, n_pad, P_pad)
    halo_idx = ((jnp.arange(1, num_tiles + 1) * TILE_P)[:, None]
                + jnp.arange(HALO_pad)[None, :])                        # (tiles, HALO_pad)
    x_halo = jnp.transpose(
        jnp.take(x_main, halo_idx, axis=2, mode="fill", fill_value=0),
        (0, 2, 1, 3))                                                   # (b,tiles,n_pad,HALO_pad)

    b31 = params["b31"].reshape(m, 1)
    b32 = params["b32"].reshape(m, 1)
    b33 = params["b33"].reshape(m, 1)

    # --- cost hint + VMEM budget (valid on v7x's 64 MiB physical VMEM) -----
    out_isz = jnp.dtype(out_dtype).itemsize
    flops = int(b * P_pad * (2 * (2 * m) * kk * n_pad + 4 * m * m))
    bytes_accessed = int(x_main.size * 2 + x_halo.size * 2 + w_scaled.size * 2
                         + b * m * P_pad * out_isz)
    cost = pl.CostEstimate(flops=flops, transcendentals=int(b * P_pad * m),
                           bytes_accessed=bytes_accessed)
    per_step = (2 * (n_pad * TILE_P * 2 + n_pad * HALO_pad * 2
                     + kk * 2 * m * n_pad * 2 + m * TILE_P * out_isz)   # dbl-buffered I/O
                + n_pad * (TILE_P + HALO_pad) * 2                       # xcat scratch
                + 6 * m * CHUNK * 4)                                    # in-kernel temps
    try:
        vmem_cap = int(pltpu.get_tpu_info().vmem_capacity_bytes)
    except Exception:                                                   # pragma: no cover
        vmem_cap = 64 * 1024 * 1024
    vmem_limit = int(min(3 * vmem_cap // 4,
                         max(4 * per_step, 8 * 1024 * 1024)))

    kern = functools.partial(sicm_kernel, k=k, m=m, wp=Wp,
                             chunk=min(CHUNK, TILE_P))

    out = pl.pallas_call(
        kern,
        out_shape=jax.ShapeDtypeStruct((b, m, P_pad), out_dtype),
        grid_spec=pltpu.PrefetchScalarGridSpec(
            num_scalar_prefetch=0,
            grid=(b, num_tiles),
            in_specs=[
                pl.BlockSpec((1, n_pad, TILE_P), lambda i, j: (i, 0, j)),         # x tile
                pl.BlockSpec((1, 1, n_pad, HALO_pad), lambda i, j: (i, j, 0, 0)), # halo
                pl.BlockSpec((1, kk, 2 * m, n_pad), lambda i, j: (i, 0, 0, 0)),   # weights
                pl.BlockSpec((m, m), lambda i, j: (0, 0)),                        # w32
                pl.BlockSpec((m, m), lambda i, j: (0, 0)),                        # w33
                pl.BlockSpec((m, 1), lambda i, j: (0, 0)),                        # b31
                pl.BlockSpec((m, 1), lambda i, j: (0, 0)),                        # b32
                pl.BlockSpec((m, 1), lambda i, j: (0, 0)),                        # b33
            ],
            out_specs=pl.BlockSpec((1, m, TILE_P), lambda i, j: (i, 0, j)),
            scratch_shapes=[pltpu.VMEM((n_pad, TILE_P + HALO_pad), jnp.bfloat16)],
        ),
        compiler_params=pltpu.CompilerParams(
            dimension_semantics=("parallel", "parallel"),
            vmem_limit_bytes=vmem_limit),
        cost_estimate=cost,
    )(x_main, x_halo, w_scaled, params["w32"], params["w33"], b31, b32, b33)

    # Kernel produced a window result at EVERY padded-input position; the
    # valid (n_H, n_W) grid is the top-left [::stride] sub-lattice.
    y_full = out[:, :, :P].reshape(b, m, Hp, Wp)
    return y_full[:, :, ::stride, ::stride][:, :, :n_H, :n_W]


# ---------------------------------------------------------------------------
# Pure-f32 JAX reference (unfold-based, mirrors the PyTorch module exactly).
# ---------------------------------------------------------------------------
def _unfold(x, k, stride, padding):
    b, n, H, W = x.shape
    xp = jnp.pad(x, ((0, 0), (0, 0), (padding, padding), (padding, padding)))
    n_H = (H + 2 * padding - k) // stride + 1
    n_W = (W + 2 * padding - k) // stride + 1
    cols = []
    for ki in range(k):
        for kj in range(k):
            cols.append(xp[:, :, ki:ki + stride * n_H:stride,
                           kj:kj + stride * n_W:stride])
    cols = jnp.stack(cols, axis=2)                                      # (b,n,kk,nH,nW)
    return cols.reshape(b, n * k * k, n_H * n_W), n_H, n_W


def sicm_reference(params, lms, *, k=3, stride=1, padding=0):
    b, n, H, W = lms.shape
    m = params["w"].shape[0]
    atw_kk = attention1_weights(params, lms)                            # (b, kk)
    atw = jnp.tile(atw_kk[:, None, :], (1, n, 1)).reshape(b, n * k * k)
    kx, n_H, n_W = _unfold(lms, k, stride, padding)                     # (b, nkk, L)
    atx = atw[:, :, None] * kx
    y = jnp.einsum("mk,bkl->bml", params["w"], atx)
    h = jnp.einsum("mk,bkl->bml", params["w31"], kx) + params["b31"][None, :, None]
    h = jnp.maximum(h, 0.0)
    h = jnp.einsum("ij,bjl->bil", params["w32"], h) + params["b32"][None, :, None]
    h = jnp.maximum(h, 0.0)
    h = jnp.einsum("ij,bjl->bil", params["w33"], h) + params["b33"][None, :, None]
    return (y + jax.nn.sigmoid(h)).reshape(b, m, n_H, n_W)


def init_params(key, in_planes, out_planes, k):
    """Parameters in PyTorch-native orientation (Conv2d weight = (out, in*k*k))."""
    n, m = in_planes, out_planes
    nkk, kk = n * k * k, k * k
    ks = jax.random.split(key, 10)
    s_n, s_kk, s_nkk, s_m = (1.0 / jnp.sqrt(n), 1.0 / jnp.sqrt(kk),
                             1.0 / jnp.sqrt(nkk), 1.0 / jnp.sqrt(m))
    f32 = jnp.float32
    return {
        # attention1: Conv2d(n, k^2, 1) -> ReLU -> Conv2d(k^2, k^2, 1)
        "a1_w1": jax.random.normal(ks[0], (kk, n), f32) * s_n,
        "a1_b1": jax.random.normal(ks[1], (kk,), f32) * 0.1,
        "a1_w2": jax.random.normal(ks[2], (kk, kk), f32) * s_kk,
        "a1_b2": jax.random.normal(ks[3], (kk,), f32) * 0.1,
        # main conv: Conv2d(n, m, k).weight viewed as (m, n*k*k)
        "w":   jax.random.normal(ks[4], (m, nkk), f32) * s_nkk,
        # attention3: Conv2d(n,m,k) -> ReLU -> Conv2d(m,m,1) -> ReLU -> Conv2d(m,m,1) -> Sigmoid
        "w31": jax.random.normal(ks[5], (m, nkk), f32) * s_nkk,
        "b31": jax.random.normal(ks[6], (m,), f32) * 0.1,
        "w32": jax.random.normal(ks[7], (m, m), f32) * s_m,
        "b32": jnp.zeros((m,), f32),
        "w33": jax.random.normal(ks[8], (m, m), f32) * s_m,
        "b33": jax.random.normal(ks[9], (m,), f32) * 0.1,
    }
    # TODO(synk): kernel_att / head from __init__ are unused in forward(); not modeled.


if __name__ == "__main__":
    b, in_planes, out_planes = 2, 4, 8
    H = W = 16
    k, stride, padding = 3, 1, 0

    key = jax.random.PRNGKey(0)
    kp, kx = jax.random.split(key)
    params = init_params(kp, in_planes, out_planes, k)
    lms = jax.random.normal(kx, (b, in_planes, H, W), jnp.float32)

    y = jax.block_until_ready(
        sicm_forward(params, lms, k=k, stride=stride, padding=padding))
    y_ref = jax.block_until_ready(
        sicm_reference(params, lms, k=k, stride=stride, padding=padding))

    n_H = (H + 2 * padding - k) // stride + 1
    assert y.shape == (b, out_planes, n_H, n_H), y.shape
    # bf16 operands (f32 accumulation) vs. the pure-f32 reference.
    max_err = float(jnp.max(jnp.abs(y - y_ref)))
    assert max_err < 3e-2, f"mismatch vs f32 reference: max abs err = {max_err}"
    print("KERNEL_OK")
</pallas_src>

<mosaic_0001>
module attributes {stable_mosaic.version = 11 : i64} {
  func.func @sicm_kernel(%arg0: i32, %arg1: i32, %arg2: memref<1x16x512xbf16, #tpu.memory_space<vmem>>, %arg3: memref<1x1x16x128xbf16, #tpu.memory_space<vmem>>, %arg4: memref<1x9x16x16xbf16, #tpu.memory_space<vmem>>, %arg5: memref<8x8xf32, #tpu.memory_space<vmem>>, %arg6: memref<8x8xf32, #tpu.memory_space<vmem>>, %arg7: memref<8x1xf32, #tpu.memory_space<vmem>>, %arg8: memref<8x1xf32, #tpu.memory_space<vmem>>, %arg9: memref<8x1xf32, #tpu.memory_space<vmem>>, %arg10: memref<1x8x512xf32, #tpu.memory_space<vmem>>, %arg11: memref<16x640xbf16, #tpu.memory_space<vmem>>) attributes {dimension_semantics = [#tpu.dimension_semantics<parallel>, #tpu.dimension_semantics<parallel>], iteration_bounds = array<i64: 2, 1>, scalar_prefetch = 0 : i64, scratch_operands = 1 : i64, tpu.core_type = #tpu.core_type<tc>, window_params = [{transform_indices = @transform_0, window_bounds = array<i64: 1, 16, 512>}, {transform_indices = @transform_1, window_bounds = array<i64: 1, 1, 16, 128>}, {transform_indices = @transform_2, window_bounds = array<i64: 1, 9, 16, 16>}, {pipeline_mode = #tpu.pipeline_mode<synchronous>, transform_indices = @transform_3, window_bounds = array<i64: 8, 8>}, {pipeline_mode = #tpu.pipeline_mode<synchronous>, transform_indices = @transform_4, window_bounds = array<i64: 8, 8>}, {pipeline_mode = #tpu.pipeline_mode<synchronous>, transform_indices = @transform_5, window_bounds = array<i64: 8, 1>}, {pipeline_mode = #tpu.pipeline_mode<synchronous>, transform_indices = @transform_6, window_bounds = array<i64: 8, 1>}, {pipeline_mode = #tpu.pipeline_mode<synchronous>, transform_indices = @transform_7, window_bounds = array<i64: 8, 1>}, {transform_indices = @transform_8, window_bounds = array<i64: 1, 8, 512>}]} {
    %c0 = arith.constant 0 : index
    %c0_0 = arith.constant 0 : index
    %c0_1 = arith.constant 0 : index
    %0 = vector.load %arg2[%c0, %c0_0, %c0_1] : memref<1x16x512xbf16, #tpu.memory_space<vmem>>, vector<1x16x512xbf16>
    %1 = vector.shape_cast %0 : vector<1x16x512xbf16> to vector<16x512xbf16>
    %c0_2 = arith.constant 0 : index
    %c0_3 = arith.constant 0 : index
    %2 = vector.load %arg11[%c0_2, %c0_3] : memref<16x640xbf16, #tpu.memory_space<vmem>>, vector<16x512xbf16>
    tpu.vector_store %arg11[%c0_2, %c0_3], %1 {strides = array<i32>} : memref<16x640xbf16, #tpu.memory_space<vmem>>, vector<16x512xbf16>,
    %c0_4 = arith.constant 0 : index
    %c0_5 = arith.constant 0 : index
    %c0_6 = arith.constant 0 : index
    %c0_7 = arith.constant 0 : index
    %3 = vector.load %arg3[%c0_4, %c0_5, %c0_6, %c0_7] : memref<1x1x16x128xbf16, #tpu.memory_space<vmem>>, vector<1x1x16x128xbf16>
    %4 = vector.shape_cast %3 : vector<1x1x16x128xbf16> to vector<16x128xbf16>
    %c0_8 = arith.constant 0 : index
    %c512 = arith.constant 512 : index
    %5 = vector.load %arg11[%c0_8, %c512] : memref<16x640xbf16, #tpu.memory_space<vmem>>, vector<16x128xbf16>
    tpu.vector_store %arg11[%c0_8, %c512], %4 {strides = array<i32>} : memref<16x640xbf16, #tpu.memory_space<vmem>>, vector<16x128xbf16>,
    %c0_9 = arith.constant 0 : index
    %c0_10 = arith.constant 0 : index
    %c0_11 = arith.constant 0 : index
    %c0_12 = arith.constant 0 : index
    %6 = vector.load %arg4[%c0_9, %c0_10, %c0_11, %c0_12] : memref<1x9x16x16xbf16, #tpu.memory_space<vmem>>, vector<1x9x16x16xbf16>
    %7 = vector.shape_cast %6 : vector<1x9x16x16xbf16> to vector<9x16x16xbf16>
    %c0_13 = arith.constant 0 : index
    %c0_14 = arith.constant 0 : index
    %8 = vector.load %arg5[%c0_13, %c0_14] : memref<8x8xf32, #tpu.memory_space<vmem>>, vector<8x8xf32>
    %c0_15 = arith.constant 0 : index
    %c0_16 = arith.constant 0 : index
    %9 = vector.load %arg6[%c0_15, %c0_16] : memref<8x8xf32, #tpu.memory_space<vmem>>, vector<8x8xf32>
    %c0_17 = arith.constant 0 : index
    %c0_18 = arith.constant 0 : index
    %10 = vector.load %arg7[%c0_17, %c0_18] : memref<8x1xf32, #tpu.memory_space<vmem>>, vector<8x1xf32>
    %c0_19 = arith.constant 0 : index
    %c0_20 = arith.constant 0 : index
    %11 = vector.load %arg8[%c0_19, %c0_20] : memref<8x1xf32, #tpu.memory_space<vmem>>, vector<8x1xf32>
    %c0_21 = arith.constant 0 : index
    %c0_22 = arith.constant 0 : index
    %12 = vector.load %arg9[%c0_21, %c0_22] : memref<8x1xf32, #tpu.memory_space<vmem>>, vector<8x1xf32>
    %cst = arith.constant 0.000000e+00 : f32
    %13 = vector.broadcast %cst : f32 to vector<16x512xf32>
    %c0_23 = arith.constant 0 : index
    %c0_24 = arith.constant 0 : index
    %14 = vector.load %arg11[%c0_23, %c0_24] : memref<16x640xbf16, #tpu.memory_space<vmem>>, vector<16x512xbf16>
    %15 = vector.extract_strided_slice %7 {offsets = [0, 0, 0], sizes = [1, 16, 16], strides = [1, 1, 1]} : vector<9x16x16xbf16> to vector<1x16x16xbf16>
    %16 = vector.shape_cast %15 : vector<1x16x16xbf16> to vector<16x16xbf16>
    %cst_25 = arith.constant dense<0.000000e+00> : vector<16x512xf32>
    %17 = tpu.matmul %16, %14, %cst_25 {dimension_numbers = #tpu.dot_dimension_numbers<[1], [0], [0], [1], [0, 0, 1, 1], [], []>} : vector<16x16xbf16>, vector<16x512xbf16>, vector<16x512xf32> -> vector<16x512xf32>
    %18 = arith.addf %13, %17 : vector<16x512xf32>
    %c0_26 = arith.constant 0 : index
    %c1 = arith.constant 1 : index
    %19 = vector.load %arg11[%c0_26, %c1] : memref<16x640xbf16, #tpu.memory_space<vmem>>, vector<16x512xbf16>
    %20 = vector.extract_strided_slice %7 {offsets = [1, 0, 0], sizes = [1, 16, 16], strides = [1, 1, 1]} : vector<9x16x16xbf16> to vector<1x16x16xbf16>
    %21 = vector.shape_cast %20 : vector<1x16x16xbf16> to vector<16x16xbf16>
    %cst_27 = arith.constant dense<0.000000e+00> : vector<16x512xf32>
    %22 = tpu.matmul %21, %19, %cst_27 {dimension_numbers = #tpu.dot_dimension_numbers<[1], [0], [0], [1], [0, 0, 1, 1], [], []>} : vector<16x16xbf16>, vector<16x512xbf16>, vector<16x512xf32> -> vector<16x512xf32>
    %23 = arith.addf %18, %22 : vector<16x512xf32>
    %c0_28 = arith.constant 0 : index
    %c2 = arith.constant 2 : index
    %24 = vector.load %arg11[%c0_28, %c2] : memref<16x640xbf16, #tpu.memory_space<vmem>>, vector<16x512xbf16>
    %25 = vector.extract_strided_slice %7 {offsets = [2, 0, 0], sizes = [1, 16, 16], strides = [1, 1, 1]} : vector<9x16x16xbf16> to vector<1x16x16xbf16>
    %26 = vector.shape_cast %25 : vector<1x16x16xbf16> to vector<16x16xbf16>
    %cst_29 = arith.constant dense<0.000000e+00> : vector<16x512xf32>
    %27 = tpu.matmul %26, %24, %cst_29 {dimension_numbers = #tpu.dot_dimension_numbers<[1], [0], [0], [1], [0, 0, 1, 1], [], []>} : vector<16x16xbf16>, vector<16x512xbf16>, vector<16x512xf32> -> vector<16x512xf32>
    %28 = arith.addf %23, %27 : vector<16x512xf32>
    %c0_30 = arith.constant 0 : index
    %c16 = arith.constant 16 : index
    %29 = vector.load %arg11[%c0_30, %c16] : memref<16x640xbf16, #tpu.memory_space<vmem>>, vector<16x512xbf16>
    %30 = vector.extract_strided_slice %7 {offsets = [3, 0, 0], sizes = [1, 16, 16], strides = [1, 1, 1]} : vector<9x16x16xbf16> to vector<1x16x16xbf16>
    %31 = vector.shape_cast %30 : vector<1x16x16xbf16> to vector<16x16xbf16>
    %cst_31 = arith.constant dense<0.000000e+00> : vector<16x512xf32>
    %32 = tpu.matmul %31, %29, %cst_31 {dimension_numbers = #tpu.dot_dimension_numbers<[1], [0], [0], [1], [0, 0, 1, 1], [], []>} : vector<16x16xbf16>, vector<16x512xbf16>, vector<16x512xf32> -> vector<16x512xf32>
    %33 = arith.addf %28, %32 : vector<16x512xf32>
    %c0_32 = arith.constant 0 : index
    %c17 = arith.constant 17 : index
    %34 = vector.load %arg11[%c0_32, %c17] : memref<16x640xbf16, #tpu.memory_space<vmem>>, vector<16x512xbf16>
    %35 = vector.extract_strided_slice %7 {offsets = [4, 0, 0], sizes = [1, 16, 16], strides = [1, 1, 1]} : vector<9x16x16xbf16> to vector<1x16x16xbf16>
    %36 = vector.shape_cast %35 : vector<1x16x16xbf16> to vector<16x16xbf16>
    %cst_33 = arith.constant dense<0.000000e+00> : vector<16x512xf32>
    %37 = tpu.matmul %36, %34, %cst_33 {dimension_numbers = #tpu.dot_dimension_numbers<[1], [0], [0], [1], [0, 0, 1, 1], [], []>} : vector<16x16xbf16>, vector<16x512xbf16>, vector<16x512xf32> -> vector<16x512xf32>
    %38 = arith.addf %33, %37 : vector<16x512xf32>
    %c0_34 = arith.constant 0 : index
    %c18 = arith.constant 18 : index
    %39 = vector.load %arg11[%c0_34, %c18] : memref<16x640xbf16, #tpu.memory_space<vmem>>, vector<16x512xbf16>
    %40 = vector.extract_strided_slice %7 {offsets = [5, 0, 0], sizes = [1, 16, 16], strides = [1, 1, 1]} : vector<9x16x16xbf16> to vector<1x16x16xbf16>
    %41 = vector.shape_cast %40 : vector<1x16x16xbf16> to vector<16x16xbf16>
    %cst_35 = arith.constant dense<0.000000e+00> : vector<16x512xf32>
    %42 = tpu.matmul %41, %39, %cst_35 {dimension_numbers = #tpu.dot_dimension_numbers<[1], [0], [0], [1], [0, 0, 1, 1], [], []>} : vector<16x16xbf16>, vector<16x512xbf16>, vector<16x512xf32> -> vector<16x512xf32>
    %43 = arith.addf %38, %42 : vector<16x512xf32>
    %c0_36 = arith.constant 0 : index
    %c32 = arith.constant 32 : index
    %44 = vector.load %arg11[%c0_36, %c32] : memref<16x640xbf16, #tpu.memory_space<vmem>>, vector<16x512xbf16>
    %45 = vector.extract_strided_slice %7 {offsets = [6, 0, 0], sizes = [1, 16, 16], strides = [1, 1, 1]} : vector<9x16x16xbf16> to vector<1x16x16xbf16>
    %46 = vector.shape_cast %45 : vector<1x16x16xbf16> to vector<16x16xbf16>
    %cst_37 = arith.constant dense<0.000000e+00> : vector<16x512xf32>
    %47 = tpu.matmul %46, %44, %cst_37 {dimension_numbers = #tpu.dot_dimension_numbers<[1], [0], [0], [1], [0, 0, 1, 1], [], []>} : vector<16x16xbf16>, vector<16x512xbf16>, vector<16x512xf32> -> vector<16x512xf32>
    %48 = arith.addf %43, %47 : vector<16x512xf32>
    %c0_38 = arith.constant 0 : index
    %c33 = arith.constant 33 : index
    %49 = vector.load %arg11[%c0_38, %c33] : memref<16x640xbf16, #tpu.memory_space<vmem>>, vector<16x512xbf16>
    %50 = vector.extract_strided_slice %7 {offsets = [7, 0, 0], sizes = [1, 16, 16], strides = [1, 1, 1]} : vector<9x16x16xbf16> to vector<1x16x16xbf16>
    %51 = vector.shape_cast %50 : vector<1x16x16xbf16> to vector<16x16xbf16>
    %cst_39 = arith.constant dense<0.000000e+00> : vector<16x512xf32>
    %52 = tpu.matmul %51, %49, %cst_39 {dimension_numbers = #tpu.dot_dimension_numbers<[1], [0], [0], [1], [0, 0, 1, 1], [], []>} : vector<16x16xbf16>, vector<16x512xbf16>, vector<16x512xf32> -> vector<16x512xf32>
    %53 = arith.addf %48, %52 : vector<16x512xf32>
    %c0_40 = arith.constant 0 : index
    %c34 = arith.constant 34 : index
    %54 = vector.load %arg11[%c0_40, %c34] : memref<16x640xbf16, #tpu.memory_space<vmem>>, vector<16x512xbf16>
    %55 = vector.extract_strided_slice %7 {offsets = [8, 0, 0], sizes = [1, 16, 16], strides = [1, 1, 1]} : vector<9x16x16xbf16> to vector<1x16x16xbf16>
    %56 = vector.shape_cast %55 : vector<1x16x16xbf16> to vector<16x16xbf16>
    %cst_41 = arith.constant dense<0.000000e+00> : vector<16x512xf32>
    %57 = tpu.matmul %56, %54, %cst_41 {dimension_numbers = #tpu.dot_dimension_numbers<[1], [0], [0], [1], [0, 0, 1, 1], [], []>} : vector<16x16xbf16>, vector<16x512xbf16>, vector<16x512xf32> -> vector<16x512xf32>
    %58 = arith.addf %53, %57 : vector<16x512xf32>
    %59 = vector.extract_strided_slice %58 {offsets = [0, 0], sizes = [8, 512], strides = [1, 1]} : vector<16x512xf32> to vector<8x512xf32>
    %60 = vector.extract_strided_slice %58 {offsets = [8, 0], sizes = [8, 512], strides = [1, 1]} : vector<16x512xf32> to vector<8x512xf32>
    %61 = vector.broadcast %10 : vector<8x1xf32> to vector<8x512xf32>
    %62 = arith.addf %60, %61 : vector<8x512xf32>
    %cst_42 = arith.constant 0.000000e+00 : f32
    %63 = vector.broadcast %cst_42 : f32 to vector<8x512xf32>
    %64 = arith.maximumf %62, %63 : vector<8x512xf32>
    %cst_43 = arith.constant dense<0.000000e+00> : vector<8x512xf32>
    %65 = tpu.matmul %8, %64, %cst_43 {dimension_numbers = #tpu.dot_dimension_numbers<[1], [0], [0], [1], [0, 0, 1, 1], [], []>} : vector<8x8xf32>, vector<8x512xf32>, vector<8x512xf32> -> vector<8x512xf32>
    %66 = vector.broadcast %11 : vector<8x1xf32> to vector<8x512xf32>
    %67 = arith.addf %65, %66 : vector<8x512xf32>
    %cst_44 = arith.constant 0.000000e+00 : f32
    %68 = vector.broadcast %cst_44 : f32 to vector<8x512xf32>
    %69 = arith.maximumf %67, %68 : vector<8x512xf32>
    %cst_45 = arith.constant dense<0.000000e+00> : vector<8x512xf32>
    %70 = tpu.matmul %9, %69, %cst_45 {dimension_numbers = #tpu.dot_dimension_numbers<[1], [0], [0], [1], [0, 0, 1, 1], [], []>} : vector<8x8xf32>, vector<8x512xf32>, vector<8x512xf32> -> vector<8x512xf32>
    %71 = vector.broadcast %12 : vector<8x1xf32> to vector<8x512xf32>
    %72 = arith.addf %70, %71 : vector<8x512xf32>
    %73 = arith.negf %72 : vector<8x512xf32>
    %74 = math.exp %73 : vector<8x512xf32>
    %cst_46 = arith.constant 1.000000e+00 : f32
    %75 = vector.broadcast %cst_46 : f32 to vector<8x512xf32>
    %76 = arith.addf %75, %74 : vector<8x512xf32>
    %77 = arith.divf %75, %76 : vector<8x512xf32>
    %78 = arith.addf %59, %77 : vector<8x512xf32>
    %c0_47 = arith.constant 0 : index
    %c0_48 = arith.constant 0 : index
    %c0_49 = arith.constant 0 : index
    %79 = vector.load %arg10[%c0_47, %c0_48, %c0_49] : memref<1x8x512xf32, #tpu.memory_space<vmem>>, vector<1x8x512xf32>
    %80 = vector.shape_cast %79 : vector<1x8x512xf32> to vector<8x512xf32>
    %81 = vector.shape_cast %78 : vector<8x512xf32> to vector<1x8x512xf32>
    tpu.vector_store %arg10[%c0_47, %c0_48, %c0_49], %81 {strides = array<i32>} : memref<1x8x512xf32, #tpu.memory_space<vmem>>, vector<1x8x512xf32>,
    return
  }
  func.func @transform_0(%arg0: i32, %arg1: i32) -> (i32, i32, i32) {
    %c0_i32 = arith.constant 0 : i32
    %c0_i32_0 = arith.constant 0 : i32
    return %arg0, %c0_i32, %arg1 : i32, i32, i32
  }
  func.func @transform_1(%arg0: i32, %arg1: i32) -> (i32, i32, i32, i32) {
    %c0_i32 = arith.constant 0 : i32
    %c0_i32_0 = arith.constant 0 : i32
    %c0_i32_1 = arith.constant 0 : i32
    return %arg0, %arg1, %c0_i32, %c0_i32_0 : i32, i32, i32, i32
  }
  func.func @transform_2(%arg0: i32, %arg1: i32) -> (i32, i32, i32, i32) {
    %c0_i32 = arith.constant 0 : i32
    %c0_i32_0 = arith.constant 0 : i32
    %c0_i32_1 = arith.constant 0 : i32
    %c0_i32_2 = arith.constant 0 : i32
    return %arg0, %c0_i32, %c0_i32_0, %c0_i32_1 : i32, i32, i32, i32
  }
  func.func @transform_3(%arg0: i32, %arg1: i32) -> (i32, i32) {
    %c0_i32 = arith.constant 0 : i32
    %c0_i32_0 = arith.constant 0 : i32
    %c0_i32_1 = arith.constant 0 : i32
    return %c0_i32, %c0_i32_0 : i32, i32
  }
  func.func @transform_4(%arg0: i32, %arg1: i32) -> (i32, i32) {
    %c0_i32 = arith.constant 0 : i32
    %c0_i32_0 = arith.constant 0 : i32
    %c0_i32_1 = arith.constant 0 : i32
    return %c0_i32, %c0_i32_0 : i32, i32
  }
  func.func @transform_5(%arg0: i32, %arg1: i32) -> (i32, i32) {
    %c0_i32 = arith.constant 0 : i32
    %c0_i32_0 = arith.constant 0 : i32
    %c0_i32_1 = arith.constant 0 : i32
    return %c0_i32, %c0_i32_0 : i32, i32
  }
  func.func @transform_6(%arg0: i32, %arg1: i32) -> (i32, i32) {
    %c0_i32 = arith.constant 0 : i32
    %c0_i32_0 = arith.constant 0 : i32
    %c0_i32_1 = arith.constant 0 : i32
    return %c0_i32, %c0_i32_0 : i32, i32
  }
  func.func @transform_7(%arg0: i32, %arg1: i32) -> (i32, i32) {
    %c0_i32 = arith.constant 0 : i32
    %c0_i32_0 = arith.constant 0 : i32
    %c0_i32_1 = arith.constant 0 : i32
    return %c0_i32, %c0_i32_0 : i32, i32
  }
  func.func @transform_8(%arg0: i32, %arg1: i32) -> (i32, i32, i32) {
    %c0_i32 = arith.constant 0 : i32
    %c0_i32_0 = arith.constant 0 : i32
    return %arg0, %c0_i32, %arg1 : i32, i32, i32
  }
}

</mosaic_0001>

<bundles_post_ra>
// kernel: tpu_custom_call.1
= control target key start
LH: loop header
LB: loop body
LE: loop exit
PB: predicated region body
PF: predicated region fallthrough
CT: control target
= control target key end

     0   :  { %s2556_s0 = inlined_call_operand.hbm [shape: bf16[2,16,512], index: 0, kind: input, shape index: {}]   ;;  %s2557_s1 = inlined_call_operand.vmem [shape: bf16[2,1,16,128], index: 1, kind: input, shape index: {}]   ;;  %s2558_s2 = inlined_call_operand.hbm [shape: bf16[2,9,16,16], index: 2, kind: input, shape index: {}]   ;;  %s2559_s3 = inlined_call_operand.vmem [shape: f32[8,8], index: 3, kind: input, shape index: {}]   ;;  %s2560_s4 = inlined_call_operand.hbm [shape: f32[8,8], index: 4, kind: input, shape index: {}]   ;;  %s2561_s5 = inlined_call_operand.vmem [shape: f32[8,1], index: 5, kind: input, shape index: {}]   ;;  %s2562_s6 = inlined_call_operand.vmem [shape: f32[8,1], index: 6, kind: input, shape index: {}]   ;;  %s2563_s7 = inlined_call_operand.vmem [shape: f32[8,1], index: 7, kind: input, shape index: {}]   ;;  %s2564_s8 = inlined_call_operand.hbm [shape: f32[2,8,512], index: 8, kind: output, shape index: {}]  }
   0x1   :  { %2571 = sst [smem:[#allocation18_spill]] %s2556_s0 }
   0x2   :  { %2572 = sst [smem:[#allocation19_spill]] %s2559_s3 }
   0x3   :  { %2573 = sst [smem:[#allocation20_spill]] %s2560_s4 }
   0x4   :  { %2574 = sst [smem:[#allocation21_spill]] %s2562_s6 }
   0x5   :  { %2575 = sst [smem:[#allocation22_spill]] %s2563_s7 }
   0x6   :  { %2576 = sst [smem:[#allocation23_spill]] %s2564_s8 }
   0x7   :  { %13 = vsyncpa [#allocation4], 0 }
   0x8   :  { %15 = vsyncpa [#allocation4 + $0x1], 0 }
   0x9   :  { %16 = vsyncpa [#allocation7], 0 }
   0xa   :  { %18 = vsyncpa [#allocation7 + $0x1], 0 }
   0xb   :  { %19 = vsyncpa [#allocation5], 0 }
   0xc   :  { %21 = vsyncpa [#allocation5 + $0x1], 0  ;;  %s2257_s27 = smov 0   ;;  %s2259_s28 = smov 0  }
   0xd   :  { %s2261_s29 = smov 0   ;;  %s2263_s30 = smov 0  }
   0xe   :  { %s2265_s9 = smov 0   ;;  %s2267_s10 = smov 0  }
   0xf LB: > { %2577 = sst [smem:[#allocation14_spill]] %s2176_s27  ;;  %s2288_s11 = sadd.s32 4294967295, %s2196_s10   ;;  %s2196_s10 = sphi %s2267_s10, %s27_s10   ;;  %s2192_s9 = sphi %s2265_s9, %s2604_s9   ;;  %s2188_s30 = sphi %s2263_s30, %s2603_s30   ;;  %s2184_s29 = sphi %s2261_s29, %s2602_s29   ;;  %s2180_s28 = sphi %s2259_s28, %s2601_s28   ;;  %s2176_s27 = sphi %s2257_s27, %s2600_s27  }
  0x10   : > { %s1743_s12 = sadd.s32 4294967294, %s2196_s10   ;;  %p55_p0 = scmp.ne.s32.totalorder %s2184_s29, %s2180_s28 }
  0x11   : > { %p56_p1 = scmp.eq.s32.totalorder %s2196_s10, 0  ;;  %p61_p2 = scmp.ne.s32.totalorder %s2180_s28, %s2176_s27 }
  0x12   : > { %p62_p3 = scmp.eq.s32.totalorder %s2288_s11, 0  ;;  %p246_p4 = scmp.eq.s32.totalorder %s2288_s11, 1 }
  0x13   : > { %p2299_p5 = por %p56_p1, %p55_p0  ;;  %p252_p6 = scmp.eq.s32.totalorder %s1743_s12, 1 }
  0x14   : > { %p2305_p7 = por %p62_p3, %p61_p2  ;;  %p2309_p8 = por %p246_p4, %p55_p0 }
  0x15   : > { %p2313_p9 = por %p252_p6, %p61_p2  ;;  %p1744_p10 = scmp.ge.s32.totalorder %s2196_s10, 1 }
  0x16   : > { %s2580_s16 = scalar_select %p2309_p8, 1, 0 }
  0x17   : > { %s2582_s17 = scalar_select %p2313_p9, 1, 0 }
  0x18   : > { %2581 = sst [smem:[#allocation15_spill]] %s2580_s16  ;;  %p259_p11 = scmp.lt.s32.totalorder %s2196_s10, 3 }
  0x19   : > { %2583 = sst [smem:[#allocation16_spill]] %s2582_s17  ;;  %s2198_s22 = smov [#allocation8]  }
  0x1a   : > { %s2584_s4 = sld [smem:[#allocation20_spill]]  ;;  %p2322_p12 = pnand %p1744_p10, %p259_p11 }
  0x1b   : > { %s276_s23 = sshll.u32 %s2198_s22, 4  ;;  %p1746_p13 = scmp.ge.s32.totalorder %s2196_s10, 2  ;;  %s277_s23 = int_to_ptr.vmem [resolvable:$true] %s276_s23 }
  0x1c   : > { %p1916_p0 = pneg %p2322_p12  ;;  %p1932_p1 = scmp.lt.s32.totalorder %s2196_s10, 2 }
  0x1d   : > { %s39_s25 = sadd.s32 1, %s2192_s9  ;;  %s296_s26 = sand.u32 1, %s2184_s29  }
  0x1e   : > { %p1917_p2 = pnand %p1916_p0, %p62_p3  ;;  %p2334_p4 = pnand %p1932_p1, %p2299_p5 }
  0x1f   : > { %p41_p6 = scmp.ge.s32.totalorder %s39_s25, 2  ;;  %s1747_s12 = sshll.u32 %s296_s26, 5 }
  0x20   : > { %s274_s20 = sshll.u32 %s2584_s4, 4  ;;  %s1882_s19 = sshll.u32 %s2192_s9, 5  ;;  %s275_s20 = int_to_ptr.hbm [resolvable:$true] %s274_s20 }
  0x21   : > { %1919 = dma.hbm_to_vmem [thread:$0]  (!%p1917_p2), %s275_s20, 128, %s277_s23, [#allocation7]  }
  0x22   : > { %s2606_s25 = smov (%p41_p6, %s39_s25), 0  ;;  %s2588_s0 = sld [smem:[#allocation18_spill]] }
  0x23   : > { %2587 = sst [smem:[#allocation17_spill]] %s2606_s25  ;;  %s43_s18 = ssub.s32 %s2192_s9, %s2606_s25 }
  0x24   : > { %p46_p10 = scmp.eq.s32.totalorder %s43_s18, 0  ;;  %s300_s4 = scalar_lea.vmem [#allocation3], %s1747_s12 }
  0x25   : > { %s310_s17 = sshll.u32 %s300_s4, 4  ;;  %s2589_s27 = sadd.s32 1, %s2184_s29  ;;  %s311_s17 = int_to_ptr.vmem [resolvable:$true] %s310_s17 }
  0x26   : > { %s2351_s16 = scalar_select %p46_p10, %s2184_s29, %s2589_s27  }
  0x27   : > { %s332_s23 = sand.u32 1, %s2196_s10   ;;  %s297_s8 = scalar_lea.sflag [#allocation4], %s296_s26 }
  0x28   : > { %s307_s13 = scalar_lea.hbm %s2588_s0, %s1882_s19  ;;  %s2199_s7 = smov 256  }
  0x29   : > { %s308_s20 = sshll.u32 %s307_s13, 4  ;;  %s2200_s25 = smov 16   ;;  %s309_s20 = int_to_ptr.hbm [resolvable:$true] %s308_s20 }
  0x2a   : > { %1923 = dma.hbm_to_vmem [thread:$0]  (!%p2334_p4), %s309_s20, 512, %s311_s17, %s297_s8, %s2199_s7, %s2199_s7, %s2200_s25  }
  0x2b   : > { %s1903_s18 = smul.u32 72, %s296_s26  ;;  %s333_s13 = scalar_lea.sflag [#allocation7], %s332_s23 }
  0x2c   : > { %s1904_s3 = smul.u32 72, %s2192_s9  ;;  %s2201_s14 = smov 64  }
  0x2d   : > { %s336_s4 = scalar_lea.vmem [#allocation6], %s1903_s18  ;;  %s2202_s0 = smov 4  }
  0x2e   : > { %s341_s12 = scalar_lea.hbm %s2558_s2, %s1904_s3  ;;  %s344_s19 = sshll.u32 %s336_s4, 4  ;;  %s345_s19 = int_to_ptr.vmem [resolvable:$true] %s344_s19 }
  0x2f   : > { %s342_s27 = sshll.u32 %s341_s12, 4  ;;  %356 = sbr.rel (%p2322_p12) target bundleno = 779 (0x30b), region = 52  ;;  %s343_s27 = int_to_ptr.hbm [resolvable:$true] %s342_s27 }
  0x30   : > { %1926 = dma.hbm_to_vmem [thread:$0]  (!%p2334_p4), %s343_s27, 1152, %s345_s19, %s333_s13, %s2201_s14, %s2201_s14, %s2202_s0  }
  0x31   : > { %s2365_s7 = sand.u32 (!%p2322_p12), 1, %s2180_s28  }
  0x32   : > { %s1752_s3 = sshll.u32 (!%p2322_p12), %s2365_s7, 5  ;;  %s359_s6 = scalar_lea.sflag (!%p2322_p12), [#allocation4], %s2365_s7 }
  0x33   : > { %s362_s8 = scalar_lea.vmem (!%p2322_p12), [#allocation3], %s1752_s3 }
  0x34   : > { %2159 = dma.done.wait (%p2305_p7), %s359_s6, 512  }
  0x35   : > { %2161 = vsyncadd (%p2305_p7), %s359_s6, 4294966784  ;;  %s368_s0 = sand.u32 1, %s2288_s11   ;;  %s1905_s17 = smul.u32 72, %s2365_s7 }
  0x36   : > { %s369_s21 = scalar_lea.sflag [#allocation7], %s368_s0 }
  0x37   : > { %s2377_s24 = scalar_lea.vmem [#allocation6], %s1905_s17 }
  0x38   : > { %2163 = dma.done.wait (%p2305_p7), %s369_s21, 1152  }
  0x39   : > { %2165 = vsyncadd (%p2305_p7), %s369_s21, 4294966144 }
  0x3a   : > { %2167 = dma.done.wait (%p62_p3), [#allocation7], 128  }
  0x3b   : > { %2169 = vsyncadd (%p62_p3), [#allocation7], 4294967168  ;;  %p426_p5 = scmp.lt.s32.totalorder %s2188_s30, 1  ;;  %v438_v2 = vld [vmem:[%s362_s8 + $0x8] sm:$0xff]  ;;  %v440_v3 = vld [vmem:[%s362_s8 + $0x18] sm:$0xff]  ;;  %s2203_s11 = smov 127  }
  0x3c   : > { %v437_v4 = vld [vmem:[%s362_s8] sm:$0xff]  ;;  %442 = vst [vmem:[#allocation2 + $0x8] sm:$0xff] %v438_v2  ;;  %v439_v5 = vld [vmem:[%s362_s8 + $0x10] sm:$0xff]  ;;  %s2204_s15 = smov 126   ;;  %s2205_s22 = smov 112   ;;  %vm518_vm0 = vcmask 1039360  }
  0x3d   : > { %s427_s25 = scalar_select %p426_p5, %s2188_s30, 1  ;;  %444 = vst [vmem:[#allocation2 + $0x1c] sm:$0xff] %v440_v3  ;;  %v1885_v30 = vld [vmem:[%s2377_s24 + $0x8] sm:$0xff]  ;;  %vm527_vm1 = vcmask 130048   ;;  %vm686_vm2 = vcmask 1031168   ;;  %v1884_v50 = vld [vmem:[%s2377_s24] sm:$0xff] }
  0x3e   : > { %441 = vst [vmem:[#allocation2] sm:$0xff] %v437_v4  ;;  %s2206_s12 = smov 111   ;;  %s2207_s4 = smov 110   ;;  %vm777_vm3 = vcmask 916480   ;;  %v1886_v63 = vld [vmem:[%s2377_s24 + $0x10] sm:$0xff]  ;;  %vm868_vm4 = vcmask 908288  }
  0x3f   : > { %s1883_s26 = sshll.u32 %s427_s25, 3  ;;  %443 = vst [vmem:[#allocation2 + $0x14] sm:$0xff] %v439_v5  ;;  %s2208_s19 = smov 96   ;;  %vm959_vm5 = vcmask 900096   ;;  %vm1050_vm6 = vcmask 785408   ;;  %vm1141_vm7 = vcmask 777216  }
  0x40   : > { %s434_s18 = scalar_lea.vmem %s2557_s1, %s1883_s26  ;;  %s2209_s27 = smov 95   ;;  %vm1232_vm8 = vcmask 769024   ;;  %vm1326_vm9 = vcmask 64512  }
  0x41   : > { %v445_v0 = vld [vmem:[%s434_s18] sm:$0xf]  ;;  %v446_v1 = vld [vmem:[%s434_s18 + $0x4] sm:$0xf]  ;;  %s2210_s13 = smov 94   ;;  %s2590_s17 = sld [smem:[#allocation21_spill]] }
  0x42   : > { %447 = vst [vmem:[#allocation2 + $0x10] sm:$0xf] %v445_v0  ;;  %s2591_s25 = sld [smem:[#allocation19_spill]]  ;;  %s2508_s18 = scalar_lea.vmem [#allocation9], %s1752_s3 }
  0x43   : > { %448 = vst [vmem:[#allocation2 + $0x24] sm:$0xf] %v446_v1  ;;  %v1771_v9 = vld [vmem:[#allocation2 + $0x8] sm:$0xf]  ;;  %v1898_v17 = vld [vmem:[#allocation2 + $0xc] sm:$0xf] }
  0x44   : > { %v1900_v10 = vld [vmem:[#allocation2 + $0x18] sm:$0xf0]  ;;  %v1773_v18 = vld [vmem:[#allocation2 + $0x1c] sm:$0xf0]  ;;  %v1799_v34 = vld [vmem:[#allocation2 + $0x8] sm:$0xf] }
  0x45   : > { %v1772_v11 = vor.u32 %v1900_v10, %v1771_v9  ;;  %v1897_v12 = vld [vmem:[#allocation2 + $0x4] sm:$0xf]  ;;  %v1763_v13 = vld [vmem:[#allocation2] sm:$0xf]  ;;  %v1776_v20 = vor.u32 %v1898_v17, %v1773_v18  ;;  %v1896_v35 = vld [vmem:[#allocation2 + $0x18] sm:$0xf0] }
  0x46   : > { %v1899_v14 = vld [vmem:[#allocation2 + $0x10] sm:$0xf0]  ;;  %v1765_v15 = vld [vmem:[#allocation2 + $0x14] sm:$0xf0]  ;;  %v1893_v24 = vld [vmem:[#allocation2 + $0x4] sm:$0xf]  ;;  %v1800_v41 = vor.u32 %v1896_v35, %v1799_v34 }
  0x47   : > { %512 = vrot.lane.b32.xlu0 %v1772_v11, %s2203_s11  ;;  %v1768_v16 = vor.u32 %v1897_v12, %v1765_v15  ;;  %v1764_v19 = vor.u32 %v1899_v14, %v1763_v13  ;;  %v1793_v25 = vld [vmem:[#allocation2 + $0x14] sm:$0xf0]  ;;  %v1791_v31 = vld [vmem:[#allocation2] sm:$0xf]  ;;  %v1895_v32 = vld [vmem:[#allocation2 + $0x10] sm:$0xf0] }
  0x48   : > { %v1796_v27 = vor.u32 %v1893_v24, %v1793_v25  ;;  %v1792_v36 = vor.u32 %v1895_v32, %v1791_v31  ;;  %v1894_v37 = vld [vmem:[#allocation2 + $0xc] sm:$0xf]  ;;  %v1801_v38 = vld [vmem:[#allocation2 + $0x1c] sm:$0xf0]  ;;  %v1889_v31 = vld [vmem:[%s2377_s24 + $0x28] sm:$0xff]  ;;  %s2592_s23 = sld [smem:[#allocation22_spill]] }
  0x49   : > { %v1779_v6 = vld [vmem:[#allocation2 + $0x10] sm:$0xf]  ;;  %510 = vrot.lane.b32.xlu2 %v1768_v16, %s2203_s11  ;;  %v1804_v43 = vor.u32 %v1894_v37, %v1801_v38  ;;  %s1902_s3 = sshll.u32 %s2188_s30, 5  ;;  %s1602_s30 = sshll.u32 %s2508_s18, 4  ;;  %s1603_s30 = int_to_ptr.vmem [resolvable:$true] %s1602_s30 }
  0x4a   : > { %v1901_v7 = vld [vmem:[#allocation2 + $0x20] sm:$0xf0] }
  0x4b   : > { %v1780_v8 = vor.u32 %v1901_v7, %v1779_v6 }
  0x4d   : > { %516 = vrot.lane.b32.xlu1 %v1780_v8, %s2203_s11 }
  0x4f   : > { %514 = vrot.lane.b32.xlu0 %v1776_v20, %s2203_s11 }
  0x51   : > { %680 = vrot.lane.b32.xlu2 %v1772_v11, %s2204_s15 }
  0x55   : > { %508 = vrot.lane.b32.xlu1 %v1764_v19, %s2203_s11 }
  0x57   : > { %682 = vrot.lane.b32.xlu0 %v1776_v20, %s2204_s15 }
  0x59   : > { %771 = vrot.lane.b32.xlu2 %v1772_v11, %s2205_s22 }
  0x5d   : > { %684 = vrot.lane.b32.xlu1 %v1780_v8, %s2204_s15 }
  0x5f   : > { %773 = vrot.lane.b32.xlu0 %v1776_v20, %s2205_s22 }
  0x61   : > { %676 = vrot.lane.b32.xlu2 %v1764_v19, %s2204_s15 }
  0x65   : > { %775 = vrot.lane.b32.xlu1 %v1780_v8, %s2205_s22 }
  0x67   : > { %678 = vrot.lane.b32.xlu0 %v1768_v16, %s2204_s15 }
  0x69   : > { %864 = vrot.lane.b32.xlu2 %v1776_v20, %s2206_s12 }
  0x6d   : > { %862 = vrot.lane.b32.xlu1 %v1772_v11, %s2206_s12 }
  0x6f   : > { %866 = vrot.lane.b32.xlu0 %v1780_v8, %s2206_s12 }
  0x71   : > { %769 = vrot.lane.b32.xlu2 %v1768_v16, %s2205_s22 }
  0x75   : > { %767 = vrot.lane.b32.xlu1 %v1764_v19, %s2205_s22  ;;  %s2595_s22 = sld [smem:[#allocation23_spill]] }
  0x77   : > { %953 = vrot.lane.b32.xlu0 %v1772_v11, %s2207_s4 }
  0x79   : > { %957 = vrot.lane.b32.xlu2 %v1780_v8, %s2207_s4 }
  0x7b   : > { %s2126_s0 = scalar_lea.hbm %s2595_s22, 64 }
  0x7d   : > { %955 = vrot.lane.b32.xlu1 %v1776_v20, %s2207_s4 }
  0x7f   : > { %858 = vrot.lane.b32.xlu0 %v1764_v19, %s2206_s12 }
  0x81   : > { %1044 = vrot.lane.b32.xlu2 %v1772_v11, %s2208_s19 }
  0x85   : > { %860 = vrot.lane.b32.xlu1 %v1768_v16, %s2206_s12  ;;  %s1600_s12 = scalar_lea.hbm %s2595_s22, %s1902_s3 }
  0x87   : > { %1046 = vrot.lane.b32.xlu0 %v1776_v20, %s2208_s19 }
  0x89   : > { %949 = vrot.lane.b32.xlu2 %v1764_v19, %s2207_s4 }
  0x8d   : > { %1048 = vrot.lane.b32.xlu1 %v1780_v8, %s2208_s19 }
  0x8f   : > { %951 = vrot.lane.b32.xlu0 %v1768_v16, %s2207_s4  ;;  %s1604_s4 = sshll.u32 %s1600_s12, 4  ;;  %s1605_s4 = int_to_ptr.hbm [resolvable:$true] %s1604_s4 }
  0x91   : > { %1137 = vrot.lane.b32.xlu2 %v1776_v20, %s2209_s27 }
  0x95   : > { %1135 = vrot.lane.b32.xlu1 %v1772_v11, %s2209_s27 }
  0x97   : > { %1139 = vrot.lane.b32.xlu0 %v1780_v8, %s2209_s27 }
  0x99   : > { %1042 = vrot.lane.b32.xlu2 %v1768_v16, %s2208_s19 }
  0x9d   : > { %1040 = vrot.lane.b32.xlu1 %v1764_v19, %s2208_s19 }
  0x9f   : > { %1226 = vrot.lane.b32.xlu0 %v1772_v11, %s2210_s13 }
  0xa1   : > { %1230 = vrot.lane.b32.xlu2 %v1780_v8, %s2210_s13  ;;  %v1887_v8 = vld [vmem:[%s2377_s24 + $0x18] sm:$0xff] }
  0xa3   : > { %v511_v21 = vpop.permute.xlu2 %510 }
  0xa5   : > { %1228 = vrot.lane.b32.xlu1 %v1776_v20, %s2210_s13 }
  0xa7   : > { %1131 = vrot.lane.b32.xlu0 %v1764_v19, %s2209_s27 }
  0xa9   : > { %1222 = vrot.lane.b32.xlu2 %v1764_v19, %s2210_s13  ;;  %v1888_v19 = vld [vmem:[%s2377_s24 + $0x20] sm:$0xff] }
  0xab   : > { %v2392_v22 = vpop.permute.xlu2 %680 }
  0xad   : > { %1133 = vrot.lane.b32.xlu1 %v1768_v16, %s2209_s27  ;;  %s1587_s27 = scalar_lea.sflag [#allocation5], %s2365_s7 }
  0xaf   : > { %1224 = vrot.lane.b32.xlu0 %v1768_v16, %s2210_s13  ;;  %s2120_s13 = sshra.s32 %s1605_s4, 4  ;;  %s2121_s13 = int_to_ptr.hbm [resolvable:$true] %s2120_s13 }
  0xb0   : > { %s2122_s14 = scalar_lea.hbm %s2121_s13, 32  ;;  %p2127_p12 = scmp.lt.s32.totalorder %s2121_s13, %s2595_s22 }
  0xb1   : > { %p2123_p3 = scmp.ne.s32.totalorder %s2121_s13, %s2122_s14  ;;  %p2128_p0 = scmp.lt.s32.totalorder %s2126_s0, %s2122_s14 }
  0xb3   : > { %v772_v23 = vpop.permute.xlu2 %771  ;;  %p2124_p7 = pnand %p2123_p3, %p2309_p8  ;;  %p2129_p1 = por %p2128_p0, %p2127_p12 }
  0xb5   : > { %p2125_p11 = pneg %p2124_p7 }
  0xb7   : > { %p2130_p2 = pnand %p2129_p1, %p2125_p11 }
  0xb9   : > { %v513_v28 = vpop.permute.xlu0 %512 }
  0xba   : > { %v520_v29 = vsel %vm518_vm0, %v511_v21, %v513_v28 }
  0xbb   : > { %552 = vmatpush.bf16.msra.mxu1 %v520_v29  ;;  %v677_v33 = vpop.permute.xlu2 %676 }
  0xbe   : > { %1782 = vmatmul.msk.bf16.vlgmr.msra.gmra.mxu1 %vm527_vm1, %v1885_v30 }
  0xbf   : > { %v517_v26 = vpop.permute.xlu1 %516  ;;  %636 = vmatpush.bf16.msrb.mxu1 %v1796_v27 }
  0xc1   : > { %v515_v42 = vpop.permute.xlu0 %514 }
  0xc2   : > { %v521_v44 = vsel %vm518_vm0, %v513_v28, %v515_v42  ;;  %v522_v45 = vsel %vm518_vm0, %v515_v42, %v517_v26 }
  0xc3   : > { %566 = vmatpush.bf16.msra.mxu2 %v521_v44  ;;  %580 = vmatpush.bf16.msra.mxu3 %v522_v45  ;;  %v865_v46 = vpop.permute.xlu2 %864 }
  0xc6   : > { %1783 = vmatmul.msk.bf16.vlgmr.msra.gmra.mxu2 %vm527_vm1, %v1885_v30  ;;  %1784 = vmatmul.msk.bf16.vlgmr.msra.gmra.mxu3 %vm527_vm1, %v1885_v30 }
  0xc7   : > { %v509_v39 = vpop.permute.xlu1 %508  ;;  %650 = vmatpush.bf16.msrb.mxu2 %v1800_v41  ;;  %664 = vmatpush.bf16.msrb.mxu3 %v1804_v43 }
  0xc8   : > { %v519_v40 = vsel %vm518_vm0, %v509_v39, %v511_v21 }
  0xc9   : > { %538 = vmatpush.bf16.msra.mxu0 %v519_v40  ;;  %v683_v48 = vpop.permute.xlu0 %682  ;;  %v1890_v40 = vld [vmem:[%s2377_s24 + $0x30] sm:$0xff] }
  0xca   : > { %v689_v49 = vsel %vm686_vm2, %v2392_v22, %v683_v48 }
  0xcb   : > { %733 = vmatpush.bf16.msra.mxu2 %v689_v49  ;;  %v770_v52 = vpop.permute.xlu2 %769  ;;  %v469_v49 = vld [vmem:[%s2561_s5] sm:$0xff] }
  0xcc   : > { %1781 = vmatmul.msk.bf16.vlgmr.msra.gmra.mxu0 %vm527_vm1, %v1885_v30  ;;  %v779_v60 = vsel %vm777_vm3, %v770_v52, %v772_v23 }
  0xcd   : > { %622 = vmatpush.bf16.msrb.mxu0 %v1792_v36 }
  0xce   : > { %1806 = vmatmul.msk.bf16.vlgmr.msrb.gmra.mxu1 %vm527_vm1, %v1884_v50 }
  0xcf   : > { %v685_v47 = vpop.permute.xlu1 %684 }
  0xd0   : > { %v690_v51 = vsel %vm686_vm2, %v683_v48, %v685_v47  ;;  %v1891_v48 = vld [vmem:[%s2377_s24 + $0x38] sm:$0xff] }
  0xd1   : > { %747 = vmatpush.bf16.msra.mxu3 %v690_v51  ;;  %v774_v54 = vpop.permute.xlu0 %773  ;;  %v1892_v51 = vld [vmem:[%s2377_s24 + $0x40] sm:$0xff] }
  0xd2   : > { %v780_v55 = vsel %vm777_vm3, %v772_v23, %v774_v54 }
  0xd3   : > { %v958_v57 = vpop.permute.xlu2 %957 }
  0xd6   : > { %1807 = vmatmul.msk.bf16.vlgmr.msrb.gmra.mxu2 %vm527_vm1, %v1884_v50  ;;  %1808 = vmatmul.msk.bf16.vlgmr.msrb.gmra.mxu3 %vm527_vm1, %v1884_v50 }
  0xd7   : > { %v776_v53 = vpop.permute.xlu1 %775  ;;  %824 = vmatpush.bf16.msrb.mxu2 %v780_v55 }
  0xd8   : > { %v781_v56 = vsel %vm777_vm3, %v774_v54, %v776_v53 }
  0xd9   : > { %838 = vmatpush.bf16.msrb.mxu3 %v781_v56  ;;  %v679_v59 = vpop.permute.xlu0 %678 }
  0xda   : > { %v688_v61 = vsel %vm686_vm2, %v679_v59, %v2392_v22  ;;  %v687_v62 = vsel %vm686_vm2, %v677_v33, %v679_v59 }
  0xdb   : > { %719 = vmatpush.bf16.msra.mxu1 %v688_v61  ;;  %705 = vmatpush.bf16.msra.mxu0 %v687_v62  ;;  %v1045_v2 = vpop.permute.xlu2 %1044 }
  0xdc   : > { %1805 = vmatmul.msk.bf16.vlgmr.msrb.gmra.mxu0 %vm527_vm1, %v1884_v50  ;;  %v2211_v50 = vmov 0  }
  0xdd   : > { %1997 = vset.pattern.permute.xlu1 %v2211_v50  ;;  %1998 = vset.pattern.permute.xlu2 %v2211_v50 }
  0xde   : > { %1814 = vmatmul.msk.bf16.vlgmr.msra.gmra.mxu1 %vm527_vm1, %v1886_v63  ;;  %1310 = vperm.xlu1 %1997, %v469_v49  }
  0xdf   : > { %v863_v58 = vpop.permute.xlu1 %862  ;;  %810 = vmatpush.bf16.msrb.mxu1 %v779_v60  ;;  %1999 = vset.pattern.permute.xlu0 %v2211_v50 }
  0xe0   : > { %v871_v4 = vsel %vm868_vm4, %v863_v58, %v865_v46 }
  0xe1   : > { %v867_v3 = vpop.permute.xlu0 %866 }
  0xe2   : > { %v872_v5 = vsel %vm868_vm4, %v865_v46, %v867_v3 }
  0xe3   : > { %v950_v9 = vpop.permute.xlu2 %949 }
  0xe6   : > { %1815 = vmatmul.msk.bf16.vlgmr.msra.gmra.mxu2 %vm527_vm1, %v1886_v63  ;;  %1816 = vmatmul.msk.bf16.vlgmr.msra.gmra.mxu3 %vm527_vm1, %v1886_v63 }
  0xe7   : > { %v768_v0 = vpop.permute.xlu1 %767  ;;  %915 = vmatpush.bf16.msra.mxu2 %v871_v4  ;;  %929 = vmatpush.bf16.msra.mxu3 %v872_v5 }
  0xe8   : > { %v778_v1 = vsel %vm777_vm3, %v768_v0, %v770_v52 }
  0xe9   : > { %796 = vmatpush.bf16.msrb.mxu0 %v778_v1  ;;  %v954_v7 = vpop.permute.xlu0 %953 }
  0xeb   : > { %v1138_v16 = vpop.permute.xlu2 %1137 }
  0xec   : > { %1813 = vmatmul.msk.bf16.vlgmr.msra.gmra.mxu0 %vm527_vm1, %v1886_v63 }
  0xee   : > { %1822 = vmatmul.msk.bf16.vlgmr.msrb.gmra.mxu1 %vm527_vm1, %v1887_v8 }
  0xef   : > { %v956_v6 = vpop.permute.xlu1 %955 }
  0xf0   : > { %v962_v14 = vsel %vm959_vm5, %v954_v7, %v956_v6  ;;  %v963_v15 = vsel %vm959_vm5, %v956_v6, %v958_v57 }
  0xf1   : > { %v859_v12 = vpop.permute.xlu0 %858 }
  0xf3   : > { %v1043_v20 = vpop.permute.xlu2 %1042 }
  0xf4   : > { %v1052_v23 = vsel %vm1050_vm6, %v1043_v20, %v1045_v2 }
  0xf6   : > { %1823 = vmatmul.msk.bf16.vlgmr.msrb.gmra.mxu2 %vm527_vm1, %v1887_v8  ;;  %1824 = vmatmul.msk.bf16.vlgmr.msrb.gmra.mxu3 %vm527_vm1, %v1887_v8 }
  0xf7   : > { %v861_v10 = vpop.permute.xlu1 %860  ;;  %1006 = vmatpush.bf16.msrb.mxu2 %v962_v14  ;;  %1020 = vmatpush.bf16.msrb.mxu3 %v963_v15 }
  0xf8   : > { %v870_v11 = vsel %vm868_vm4, %v861_v10, %v863_v58  ;;  %v869_v13 = vsel %vm868_vm4, %v859_v12, %v861_v10 }
  0xf9   : > { %901 = vmatpush.bf16.msra.mxu1 %v870_v11  ;;  %887 = vmatpush.bf16.msra.mxu0 %v869_v13  ;;  %v1047_v18 = vpop.permute.xlu0 %1046 }
  0xfa   : > { %v1053_v26 = vsel %vm1050_vm6, %v1045_v2, %v1047_v18 }
  0xfb   : > { %v1231_v36 = vpop.permute.xlu2 %1230 }
  0xfc   : > { %1821 = vmatmul.msk.bf16.vlgmr.msrb.gmra.mxu0 %vm527_vm1, %v1887_v8 }
  0xfe   : > { %1830 = vmatmul.msk.bf16.vlgmr.msra.gmra.mxu1 %vm527_vm1, %v1888_v19 }
  0xff   : > { %v1049_v17 = vpop.permute.xlu1 %1048 }
 0x100   : > { %v1054_v27 = vsel %vm1050_vm6, %v1047_v18, %v1049_v17 }
 0x101   : > { %v952_v22 = vpop.permute.xlu0 %951 }
 0x102   : > { %v961_v24 = vsel %vm959_vm5, %v952_v22, %v954_v7  ;;  %v960_v25 = vsel %vm959_vm5, %v950_v9, %v952_v22 }
 0x103   : > { %992 = vmatpush.bf16.msrb.mxu1 %v961_v24  ;;  %978 = vmatpush.bf16.msrb.mxu0 %v960_v25  ;;  %v1223_v42 = vpop.permute.xlu2 %1222 }
 0x106   : > { %1831 = vmatmul.msk.bf16.vlgmr.msra.gmra.mxu2 %vm527_vm1, %v1888_v19  ;;  %1832 = vmatmul.msk.bf16.vlgmr.msra.gmra.mxu3 %vm527_vm1, %v1888_v19 }
 0x107   : > { %v1136_v21 = vpop.permute.xlu1 %1135  ;;  %1083 = vmatpush.bf16.msra.mxu1 %v1052_v23  ;;  %1097 = vmatpush.bf16.msra.mxu2 %v1053_v26 }
 0x108   : > { %1111 = vmatpush.bf16.msra.mxu3 %v1054_v27  ;;  %v1144_v34 = vsel %vm1141_vm7, %v1136_v21, %v1138_v16 }
 0x109   : > { %v1140_v30 = vpop.permute.xlu0 %1139 }
 0x10a   : > { %v1145_v35 = vsel %vm1141_vm7, %v1138_v16, %v1140_v30 }
 0x10c   : > { %1829 = vmatmul.msk.bf16.vlgmr.msra.gmra.mxu0 %vm527_vm1, %v1888_v19 }
 0x10e   : > { %1838 = vmatmul.msk.bf16.vlgmr.msrb.gmra.mxu1 %vm527_vm1, %v1889_v31 }
 0x10f   : > { %v1041_v28 = vpop.permute.xlu1 %1040 }
 0x110   : > { %v1051_v29 = vsel %vm1050_vm6, %v1041_v28, %v1043_v20 }
 0x111   : > { %1069 = vmatpush.bf16.msra.mxu0 %v1051_v29  ;;  %v1227_v33 = vpop.permute.xlu0 %1226 }
 0x116   : > { %1839 = vmatmul.msk.bf16.vlgmr.msrb.gmra.mxu2 %vm527_vm1, %v1889_v31  ;;  %1840 = vmatmul.msk.bf16.vlgmr.msrb.gmra.mxu3 %vm527_vm1, %v1889_v31 }
 0x117   : > { %v1229_v32 = vpop.permute.xlu1 %1228  ;;  %1188 = vmatpush.bf16.msrb.mxu2 %v1144_v34  ;;  %1202 = vmatpush.bf16.msrb.mxu3 %v1145_v35 }
 0x118   : > { %v1235_v46 = vsel %vm1232_vm8, %v1227_v33, %v1229_v32  ;;  %v1236_v47 = vsel %vm1232_vm8, %v1229_v32, %v1231_v36 }
 0x119   : > { %v1132_v39 = vpop.permute.xlu0 %1131 }
 0x11c   : > { %1837 = vmatmul.msk.bf16.vlgmr.msrb.gmra.mxu0 %vm527_vm1, %v1889_v31 }
 0x11e   : > { %1846 = vmatmul.msk.bf16.vlgmr.msra.gmra.mxu1 %vm527_vm1, %v1890_v40 }
 0x11f   : > { %v1134_v37 = vpop.permute.xlu1 %1133 }
 0x120   : > { %v1143_v38 = vsel %vm1141_vm7, %v1134_v37, %v1136_v21  ;;  %v1142_v41 = vsel %vm1141_vm7, %v1132_v39, %v1134_v37 }
 0x121   : > { %1174 = vmatpush.bf16.msrb.mxu1 %v1143_v38  ;;  %1160 = vmatpush.bf16.msrb.mxu0 %v1142_v41  ;;  %v1225_v43 = vpop.permute.xlu0 %1224 }
 0x122   : > { %v1234_v44 = vsel %vm1232_vm8, %v1225_v43, %v1227_v33  ;;  %v1233_v45 = vsel %vm1232_vm8, %v1223_v42, %v1225_v43 }
 0x125   : > { %1265 = vmatpush.bf16.msra.mxu1 %v1234_v44 }
 0x126   : > { %1847 = vmatmul.msk.bf16.vlgmr.msra.gmra.mxu2 %vm527_vm1, %v1890_v40  ;;  %1848 = vmatmul.msk.bf16.vlgmr.msra.gmra.mxu3 %vm527_vm1, %v1890_v40 }
 0x127   : > { %1279 = vmatpush.bf16.msra.mxu2 %v1235_v46  ;;  %1293 = vmatpush.bf16.msra.mxu3 %v1236_v47 }
 0x12c   : > { %1845 = vmatmul.msk.bf16.vlgmr.msra.gmra.mxu0 %vm527_vm1, %v1890_v40 }
 0x12d   : > { %1251 = vmatpush.bf16.msra.mxu0 %v1233_v45 }
 0x12e   : > { %1854 = vmatmul.msk.bf16.vlgmr.msrb.gmra.mxu1 %vm527_vm1, %v1891_v48 }
 0x136   : > { %1855 = vmatmul.msk.bf16.vlgmr.msrb.gmra.mxu2 %vm527_vm1, %v1891_v48  ;;  %1856 = vmatmul.msk.bf16.vlgmr.msrb.gmra.mxu3 %vm527_vm1, %v1891_v48 }
 0x13b   : > { %v554_v52 = vpop.f32.mrf.mxu1 }
 0x13c   : > { %1853 = vmatmul.msk.bf16.vlgmr.msrb.gmra.mxu0 %vm527_vm1, %v1891_v48 }
 0x13e   : > { %1862 = vmatmul.msk.bf16.vlgmr.msra.gmra.mxu1 %vm527_vm1, %v1892_v51 }
 0x143   : > { %v556_v54 = vpop.f32.mrf.mxu1 }
 0x146   : > { %1863 = vmatmul.msk.bf16.vlgmr.msra.gmra.mxu2 %vm527_vm1, %v1892_v51  ;;  %1864 = vmatmul.msk.bf16.vlgmr.msra.gmra.mxu3 %vm527_vm1, %v1892_v51 }
 0x149   : > { %v540_v53 = vpop.f32.mrf.mxu0  ;;  %v568_v55 = vpop.f32.mrf.mxu2 }
 0x14a   : > { %v582_v56 = vpop.f32.mrf.mxu3 }
 0x14b   : > { %v638_v58 = vpop.f32.mrf.mxu1 }
 0x14c   : > { %1861 = vmatmul.msk.bf16.vlgmr.msra.gmra.mxu0 %vm527_vm1, %v1892_v51  ;;  %v639_v59 = vadd.f32 %v638_v58, %v554_v52 }
 0x151   : > { %v542_v57 = vpop.f32.mrf.mxu0  ;;  %v570_v60 = vpop.f32.mrf.mxu2 }
 0x152   : > { %v584_v61 = vpop.f32.mrf.mxu3 }
 0x153   : > { %v640_v0 = vpop.f32.mrf.mxu1 }
 0x154   : > { %v641_v1 = vadd.f32 %v640_v0, %v556_v54 }
 0x159   : > { %v624_v62 = vpop.f32.mrf.mxu0  ;;  %v652_v2 = vpop.f32.mrf.mxu2 }
 0x15a   : > { %v625_v63 = vadd.f32 %v624_v62, %v540_v53  ;;  %v666_v3 = vpop.f32.mrf.mxu3  ;;  %v653_v4 = vadd.f32 %v652_v2, %v568_v55 }
 0x15b   : > { %v667_v5 = vadd.f32 %v666_v3, %v582_v56  ;;  %v721_v8 = vpop.f32.mrf.mxu1 }
 0x15c   : > { %v755_v9 = vadd.f32 %v721_v8, %v639_v59 }
 0x161   : > { %v626_v6 = vpop.f32.mrf.mxu0  ;;  %v654_v10 = vpop.f32.mrf.mxu2 }
 0x162   : > { %v627_v7 = vadd.f32 %v626_v6, %v542_v57  ;;  %v668_v11 = vpop.f32.mrf.mxu3  ;;  %v655_v12 = vadd.f32 %v654_v10, %v570_v60 }
 0x163   : > { %v669_v13 = vadd.f32 %v668_v11, %v584_v61  ;;  %v723_v16 = vpop.f32.mrf.mxu1 }
 0x164   : > { %v759_v17 = vadd.f32 %v723_v16, %v641_v1 }
 0x169   : > { %v707_v14 = vpop.f32.mrf.mxu0  ;;  %v735_v18 = vpop.f32.mrf.mxu2 }
 0x16a   : > { %v754_v15 = vadd.f32 %v707_v14, %v625_v63  ;;  %v749_v19 = vpop.f32.mrf.mxu3  ;;  %v756_v20 = vadd.f32 %v735_v18, %v653_v4 }
 0x16b   : > { %v757_v21 = vadd.f32 %v749_v19, %v667_v5  ;;  %v812_v24 = vpop.f32.mrf.mxu1 }
 0x16c   : > { %v846_v25 = vadd.f32 %v812_v24, %v755_v9 }
 0x171   : > { %v709_v22 = vpop.f32.mrf.mxu0  ;;  %v737_v26 = vpop.f32.mrf.mxu2 }
 0x172   : > { %v758_v23 = vadd.f32 %v709_v22, %v627_v7  ;;  %v751_v27 = vpop.f32.mrf.mxu3  ;;  %v760_v28 = vadd.f32 %v737_v26, %v655_v12 }
 0x173   : > { %v761_v29 = vadd.f32 %v751_v27, %v669_v13  ;;  %v814_v32 = vpop.f32.mrf.mxu1 }
 0x174   : > { %v850_v33 = vadd.f32 %v814_v32, %v759_v17 }
 0x179   : > { %v798_v30 = vpop.f32.mrf.mxu0  ;;  %v826_v34 = vpop.f32.mrf.mxu2 }
 0x17a   : > { %v845_v31 = vadd.f32 %v798_v30, %v754_v15  ;;  %v840_v35 = vpop.f32.mrf.mxu3  ;;  %v847_v36 = vadd.f32 %v826_v34, %v756_v20 }
 0x17b   : > { %v848_v37 = vadd.f32 %v840_v35, %v757_v21  ;;  %v903_v40 = vpop.f32.mrf.mxu1 }
 0x17c   : > { %v937_v41 = vadd.f32 %v903_v40, %v846_v25 }
 0x181   : > { %v800_v38 = vpop.f32.mrf.mxu0  ;;  %v828_v42 = vpop.f32.mrf.mxu2 }
 0x182   : > { %v849_v39 = vadd.f32 %v800_v38, %v758_v23  ;;  %v842_v43 = vpop.f32.mrf.mxu3  ;;  %v2468_v44 = vadd.f32 %v828_v42, %v760_v28  ;;  %v470_v23 = vld [vmem:[%s2590_s17] sm:$0xff] }
 0x183   : > { %v2470_v45 = vadd.f32 %v842_v43, %v761_v29  ;;  %v905_v48 = vpop.f32.mrf.mxu1  ;;  %1323 = vperm.xlu2 %1998, %v470_v23  }
 0x184   : > { %v941_v28 = vadd.f32 %v905_v48, %v850_v33  ;;  %v467_v33 = vld [vmem:[%s2591_s25] sm:$0xff] }
 0x189   : > { %v889_v46 = vpop.f32.mrf.mxu0  ;;  %v917_v49 = vpop.f32.mrf.mxu2 }
 0x18a   : > { %v936_v47 = vadd.f32 %v889_v46, %v845_v31  ;;  %v931_v50 = vpop.f32.mrf.mxu3  ;;  %v938_v51 = vadd.f32 %v917_v49, %v847_v36 }
 0x18b   : > { %v939_v52 = vadd.f32 %v931_v50, %v848_v37  ;;  %v994_v54 = vpop.f32.mrf.mxu1 }
 0x18c   : > { %v1028_v55 = vadd.f32 %v994_v54, %v937_v41  ;;  %v1311_v41 = vpop.permute.xlu1 %1310 }
 0x191   : > { %v891_v53 = vpop.f32.mrf.mxu0  ;;  %v919_v56 = vpop.f32.mrf.mxu2 }
 0x192   : > { %v933_v57 = vpop.f32.mrf.mxu3  ;;  %v940_v37 = vadd.f32 %v891_v53, %v849_v39 }
 0x193   : > { %v996_v60 = vpop.f32.mrf.mxu1  ;;  %v943_v39 = vadd.f32 %v933_v57, %v2470_v45 }
 0x194   : > { %v1032_v30 = vadd.f32 %v996_v60, %v941_v28 }
 0x199   : > { %v980_v58 = vpop.f32.mrf.mxu0  ;;  %v1008_v61 = vpop.f32.mrf.mxu2 }
 0x19a   : > { %v1027_v59 = vadd.f32 %v980_v58, %v936_v47  ;;  %v1022_v62 = vpop.f32.mrf.mxu3  ;;  %v1029_v63 = vadd.f32 %v1008_v61, %v938_v51 }
 0x19b   : > { %v1030_v0 = vadd.f32 %v1022_v62, %v939_v52  ;;  %v1085_v2 = vpop.f32.mrf.mxu1  ;;  %v942_v52 = vadd.f32 %v919_v56, %v2468_v44 }
 0x19c   : > { %v1119_v3 = vadd.f32 %v1085_v2, %v1028_v55 }
 0x1a1   : > { %v982_v1 = vpop.f32.mrf.mxu0  ;;  %v1010_v4 = vpop.f32.mrf.mxu2 }
 0x1a2   : > { %v1024_v5 = vpop.f32.mrf.mxu3  ;;  %v1031_v43 = vadd.f32 %v982_v1, %v940_v37 }
 0x1a3   : > { %v1087_v8 = vpop.f32.mrf.mxu1  ;;  %v1034_v60 = vadd.f32 %v1024_v5, %v943_v39 }
 0x1a4   : > { %v1123_v31 = vadd.f32 %v1087_v8, %v1032_v30 }
 0x1a9   : > { %v1071_v6 = vpop.f32.mrf.mxu0  ;;  %v1099_v9 = vpop.f32.mrf.mxu2 }
 0x1aa   : > { %v1118_v7 = vadd.f32 %v1071_v6, %v1027_v59  ;;  %v1113_v10 = vpop.f32.mrf.mxu3  ;;  %v1120_v11 = vadd.f32 %v1099_v9, %v1029_v63  ;;  %v1033_v59 = vadd.f32 %v1010_v4, %v942_v52  ;;  %v471_v4 = vld [vmem:[%s2592_s23] sm:$0xff] }
 0x1ab   : > { %v1121_v12 = vadd.f32 %v1113_v10, %v1030_v0  ;;  %v1176_v14 = vpop.f32.mrf.mxu1  ;;  %1416 = vperm.xlu0 %1999, %v471_v4  }
 0x1ac   : > { %v1210_v15 = vadd.f32 %v1176_v14, %v1119_v3 }
 0x1b1   : > { %v1073_v13 = vpop.f32.mrf.mxu0  ;;  %v1101_v16 = vpop.f32.mrf.mxu2 }
 0x1b2   : > { %v1115_v17 = vpop.f32.mrf.mxu3  ;;  %v1122_v47 = vadd.f32 %v1073_v13, %v1031_v43  ;;  %v1124_v62 = vadd.f32 %v1101_v16, %v1033_v59 }
 0x1b3   : > { %v1178_v20 = vpop.f32.mrf.mxu1  ;;  %v1125_v63 = vadd.f32 %v1115_v17, %v1034_v60 }
 0x1b4   : > { %v1214_v35 = vadd.f32 %v1178_v20, %v1123_v31 }
 0x1b9   : > { %v1162_v18 = vpop.f32.mrf.mxu0  ;;  %v1190_v21 = vpop.f32.mrf.mxu2 }
 0x1ba   : > { %v1209_v19 = vadd.f32 %v1162_v18, %v1118_v7  ;;  %v1204_v22 = vpop.f32.mrf.mxu3  ;;  %v1211_v24 = vadd.f32 %v1190_v21, %v1120_v11 }
 0x1bb   : > { %v1212_v25 = vadd.f32 %v1204_v22, %v1121_v12  ;;  %v1267_v27 = vpop.f32.mrf.mxu1  ;;  %v468_v12 = vld [vmem:[#allocation8] sm:$0xff] }
 0x1bc   : > { %v2475_v29 = vadd.f32 %v1267_v27, %v1210_v15 }
 0x1c1   : > { %v1164_v26 = vpop.f32.mrf.mxu0  ;;  %v1192_v32 = vpop.f32.mrf.mxu2 }
 0x1c2   : > { %v1206_v34 = vpop.f32.mrf.mxu3  ;;  %v1213_v48 = vadd.f32 %v1164_v26, %v1122_v47  ;;  %v1215_v1 = vadd.f32 %v1192_v32, %v1124_v62 }
 0x1c3   : > { %v1269_v40 = vpop.f32.mrf.mxu1  ;;  %v1216_v2 = vadd.f32 %v1206_v34, %v1125_v63 }
 0x1c4   : > { %v1305_v42 = vadd.f32 %v1269_v40, %v1214_v35 }
 0x1c6   : > { %v1314_v46 = vadd.f32 %v1311_v41, %v1305_v42 }
 0x1c8   : > { %v1318_v49 = vmax.f32 %v1314_v46, 0.0 }
 0x1c9   : > { %v1253_v36 = vpop.f32.mrf.mxu0  ;;  %v1281_v50 = vpop.f32.mrf.mxu2 }
 0x1ca   : > { %v2477_v38 = vadd.f32 %v1253_v36, %v1209_v19  ;;  %v1295_v51 = vpop.f32.mrf.mxu3  ;;  %v2484_v53 = vadd.f32 %v1281_v50, %v1211_v24  ;;  %1365 = vmatpush.msrb.mxu1 %v1318_v49 }
 0x1cb   : > { %v2486_v54 = vadd.f32 %v1295_v51, %v1212_v25  ;;  %1866 = vmatmul.msk.f32.vlgmr.msrb.gmra.mxu1 %vm1326_vm9, %v467_v33 }
 0x1d1   : > { %v1255_v55 = vpop.f32.mrf.mxu0  ;;  %v1283_v44 = vpop.f32.mrf.mxu2 }
 0x1d2   : > { %v1304_v58 = vadd.f32 %v1255_v55, %v1213_v48  ;;  %v1297_v56 = vpop.f32.mrf.mxu3  ;;  %v1306_v45 = vadd.f32 %v1283_v44, %v1215_v1 }
 0x1d3   : > { %v1307_v57 = vadd.f32 %v1297_v56, %v1216_v2 }
 0x1d4   : > { %v1313_v61 = vadd.f32 %v1311_v41, %v1304_v58  ;;  %v1315_v3 = vadd.f32 %v1311_v41, %v1306_v45 }
 0x1d5   : > { %v1316_v6 = vadd.f32 %v1311_v41, %v1307_v57 }
 0x1d6   : > { %v1317_v0 = vmax.f32 %v1313_v61, 0.0  ;;  %v1319_v7 = vmax.f32 %v1315_v3, 0.0 }
 0x1d7   : > { %v1320_v8 = vmax.f32 %v1316_v6, 0.0 }
 0x1d8   : > { %1345 = vmatpush.msrb.mxu0 %v1317_v0  ;;  %1385 = vmatpush.msrb.mxu2 %v1319_v7 }
 0x1d9   : > { %1865 = vmatmul.msk.f32.vlgmr.msrb.gmra.mxu0 %vm1326_vm9, %v467_v33  ;;  %1405 = vmatpush.msrb.mxu3 %v1320_v8 }
 0x1da   : > { %1867 = vmatmul.msk.f32.vlgmr.msrb.gmra.mxu2 %vm1326_vm9, %v467_v33  ;;  %1868 = vmatmul.msk.f32.vlgmr.msrb.gmra.mxu3 %vm1326_vm9, %v467_v33 }
 0x1dd   : > { %v1324_v5 = vpop.permute.xlu2 %1323 }
 0x21d   : > { %v1417_v22 = vpop.permute.xlu0 %1416 }
 0x248   : > { %v1367_v9 = vpop.f32.mrf.mxu1 }
 0x249   : > { %v1368_v10 = vadd.f32 %v1367_v9, %v1324_v5 }
 0x24b   : > { %v1411_v11 = vmax.f32 %v1368_v10, 0.0 }
 0x24d   : > { %1457 = vmatpush.msra.mxu1 %v1411_v11 }
 0x24e   : > { %1870 = vmatmul.msk.f32.vlgmr.msra.gmra.mxu1 %vm1326_vm9, %v468_v12 }
 0x256   : > { %v1347_v13 = vpop.f32.mrf.mxu0 }
 0x257   : > { %v1348_v14 = vadd.f32 %v1347_v13, %v1324_v5 }
 0x259   : > { %v1410_v15 = vmax.f32 %v1348_v14, 0.0 }
 0x25b   : > { %1437 = vmatpush.msra.mxu0 %v1410_v15 }
 0x25c   : > { %1869 = vmatmul.msk.f32.vlgmr.msra.gmra.mxu0 %vm1326_vm9, %v468_v12 }
 0x25d   : > { %v1387_v16 = vpop.f32.mrf.mxu2  ;;  %v1407_v17 = vpop.f32.mrf.mxu3 }
 0x25e   : > { %v1388_v18 = vadd.f32 %v1387_v16, %v1324_v5  ;;  %v1408_v19 = vadd.f32 %v1407_v17, %v1324_v5 }
 0x260   : > { %v1412_v20 = vmax.f32 %v1388_v18, 0.0  ;;  %v1413_v21 = vmax.f32 %v1408_v19, 0.0 }
 0x262   : > { %1477 = vmatpush.msra.mxu2 %v1412_v20  ;;  %1497 = vmatpush.msra.mxu3 %v1413_v21 }
 0x263   : > { %1871 = vmatmul.msk.f32.vlgmr.msra.gmra.mxu2 %vm1326_vm9, %v468_v12  ;;  %1872 = vmatmul.msk.f32.vlgmr.msra.gmra.mxu3 %vm1326_vm9, %v468_v12 }
 0x2cb   : > { %v1459_v23 = vpop.f32.mrf.mxu1 }
 0x2cc   : > { %v1460_v24 = vadd.f32 %v1459_v23, %v1417_v22 }
 0x2ce   : > { %v1874_v25 = vmul.f32 -1.442695, %v1460_v24 }
 0x2d0   : > { %2000 = vpow2.f32 %v1874_v25 }
 0x2d6   : > { %v2001_v30 = vpop.eup %2000 }
 0x2d7   : > { %v1515_v31 = vadd.f32 1.0, %v2001_v30 }
 0x2d9   : > { %v1439_v26 = vpop.f32.mrf.mxu0  ;;  %v1544_v37 = vand.u32 2147483648, %v1515_v31  ;;  %vm1538_vm10 = vweird.f32 %v1515_v31  ;;  %v1542_v41 = vand.u32 2147483647, %v1515_v31 }
 0x2da   : > { %v1440_v27 = vadd.f32 %v1439_v26, %v1417_v22 }
 0x2db   : > { %v1545_v46 = vor.u32 1.1754944e-38, %v1544_v37  ;;  %vm1543_vm13 = vcmp.eq.f32.partialorder %v1542_v41, 8.507059e+37 }
 0x2dc   : > { %v1873_v28 = vmul.f32 -1.442695, %v1440_v27 }
 0x2de   : > { %2002 = vpow2.f32 %v1873_v28 }
 0x2df   : > { %2004 = vrcp.f32 %v1515_v31 }
 0x2e4   : > { %v2003_v32 = vpop.eup %2002 }
 0x2e5   : > { %v1514_v34 = vadd.f32 1.0, %v2003_v32  ;;  %v2005_v35 = vpop.eup %2004 }
 0x2e6   : > { %v1534_v36 = vmul.f32 %v2005_v35, %v1515_v31  ;;  %vm1539_vm11 = vweird.f32 %v2005_v35  ;;  %v1479_v47 = vpop.f32.mrf.mxu2  ;;  %v1499_v49 = vpop.f32.mrf.mxu3 }
 0x2e7   : > { %2006 = vrcp.f32 %v1514_v34  ;;  %vm2499_vm12 = vmor %vm1538_vm10, %vm1539_vm11  ;;  %v1480_v50 = vadd.f32 %v1479_v47, %v1417_v22  ;;  %v1500_v51 = vadd.f32 %v1499_v49, %v1417_v22  ;;  %vm1523_vm14 = vweird.f32 %v1514_v34 }
 0x2e8   : > { %v1535_v40 = vsub.f32 1.0, %v1534_v36  ;;  %v1529_v55 = vand.u32 2147483648, %v1514_v34  ;;  %v1527_v62 = vand.u32 2147483647, %v1514_v34 }
 0x2e9   : > { %v1875_v58 = vmul.f32 -1.442695, %v1480_v50  ;;  %v1876_v59 = vmul.f32 -1.442695, %v1500_v51 }
 0x2ea   : > { %v1536_v42 = vmul.f32 %v2005_v35, %v1535_v40  ;;  %v1530_v1 = vor.u32 1.1754944e-38, %v1529_v55  ;;  %vm1528_vm1 = vcmp.eq.f32.partialorder %v1527_v62, 8.507059e+37 }
 0x2eb   : > { %2008 = vpow2.f32 %v1875_v58 }
 0x2ec   : > { %v1537_v48 = vadd.f32 %v2005_v35, %v1536_v42  ;;  %2010 = vpow2.f32 %v1876_v59 }
 0x2ed   : > { %v2007_v33 = vpop.eup %2006 }
 0x2ee   : > { %v1519_v52 = vmul.f32 %v2007_v33, %v1514_v34  ;;  %v1541_v39 = vsel %vm2499_vm12, %v2005_v35, %v1537_v48  ;;  %vm1524_vm15 = vweird.f32 %v2007_v33 }
 0x2ef   : > { %v1546_v60 = vsel %vm1543_vm13, %v1545_v46, %v1541_v39  ;;  %vm1525_vm0 = vmor %vm1523_vm14, %vm1524_vm15 }
 0x2f0   : > { %v1520_v61 = vsub.f32 1.0, %v1519_v52  ;;  %v1579_v63 = vadd.f32 %v1546_v60, %v2475_v29 }
 0x2f1   : > { %v2009_v56 = vpop.eup %2008 }
 0x2f2   : > { %v1521_v0 = vmul.f32 %v2007_v33, %v1520_v61  ;;  %1583 = vst [vmem:[%s2508_s18 + $0x8] sm:$0xff] %v1579_v63  ;;  %v2011_v57 = vpop.eup %2010  ;;  %v1516_v3 = vadd.f32 1.0, %v2009_v56 }
 0x2f3   : > { %v1517_v6 = vadd.f32 1.0, %v2011_v57 }
 0x2f4   : > { %v1522_v2 = vadd.f32 %v2007_v33, %v1521_v0  ;;  %2012 = vrcp.f32 %v1516_v3  ;;  %v1559_v10 = vand.u32 2147483648, %v1516_v3  ;;  %v1557_v13 = vand.u32 2147483647, %v1516_v3 }
 0x2f5   : > { %2014 = vrcp.f32 %v1517_v6  ;;  %v1574_v14 = vand.u32 2147483648, %v1517_v6  ;;  %vm1553_vm4 = vweird.f32 %v1516_v3  ;;  %vm1568_vm6 = vweird.f32 %v1517_v6 }
 0x2f6   : > { %v1526_v44 = vsel %vm1525_vm0, %v2007_v33, %v1522_v2  ;;  %v1560_v17 = vor.u32 1.1754944e-38, %v1559_v10  ;;  %vm1558_vm7 = vcmp.eq.f32.partialorder %v1557_v13, 8.507059e+37 }
 0x2f7   : > { %v1531_v45 = vsel %vm1528_vm1, %v1530_v1, %v1526_v44  ;;  %v1575_v20 = vor.u32 1.1754944e-38, %v1574_v14 }
 0x2f8   : > { %v1578_v29 = vadd.f32 %v1531_v45, %v2477_v38  ;;  %v1572_v38 = vand.u32 2147483647, %v1517_v6 }
 0x2fa   : > { %1582 = vst [vmem:[%s2508_s18] sm:$0xff] %v1578_v29  ;;  %v2013_v7 = vpop.eup %2012  ;;  %vm1573_vm9 = vcmp.eq.f32.partialorder %v1572_v38, 8.507059e+37 }
 0x2fb   : > { %v2015_v8 = vpop.eup %2014  ;;  %v1549_v4 = vmul.f32 %v2013_v7, %v1516_v3  ;;  %vm1554_vm2 = vweird.f32 %v2013_v7 }
 0x2fc   : > { %v1564_v5 = vmul.f32 %v2015_v8, %v1517_v6  ;;  %vm1569_vm3 = vweird.f32 %v2015_v8  ;;  %vm1555_vm5 = vmor %vm1553_vm4, %vm1554_vm2 }
 0x2fd   : > { %v1550_v9 = vsub.f32 1.0, %v1549_v4  ;;  %vm1570_vm8 = vmor %vm1568_vm6, %vm1569_vm3 }
 0x2fe   : > { %v1565_v11 = vsub.f32 1.0, %v1564_v5 }
 0x2ff   : > { %v1551_v12 = vmul.f32 %v2013_v7, %v1550_v9 }
 0x300   : > { %v1566_v15 = vmul.f32 %v2015_v8, %v1565_v11 }
 0x301   : > { %v1552_v16 = vadd.f32 %v2013_v7, %v1551_v12 }
 0x302   : > { %v1567_v18 = vadd.f32 %v2015_v8, %v1566_v15 }
 0x303   : > { %v1556_v19 = vsel %vm1555_vm5, %v2013_v7, %v1552_v16 }
 0x304   : > { %v1561_v21 = vsel %vm1558_vm7, %v1560_v17, %v1556_v19  ;;  %v1571_v22 = vsel %vm1570_vm8, %v2015_v8, %v1567_v18 }
 0x305   : > { %v1580_v23 = vadd.f32 %v1561_v21, %v2484_v53  ;;  %v1576_v24 = vsel %vm1573_vm9, %v1575_v20, %v1571_v22 }
 0x306   : > { %v1581_v25 = vadd.f32 %v1576_v24, %v2486_v54 }
 0x307   : > { %1584 = vst [vmem:[%s2508_s18 + $0x10] sm:$0xff] %v1580_v23 }
 0x308   : > { %1585 = vst [vmem:[%s2508_s18 + $0x18] sm:$0xff] %v1581_v25 }
 0x309   : > { %2133 = shalt.err (!%p2130_p2)
}
 0x30a   : > { %1914 = dma.vmem_to_hbm [thread:$0]  (%p2309_p8), %s1603_s30, 512, %s1605_s4, %s1587_s27  }
 0x30b PF: > { %s2597_s7 = sld [smem:[#allocation14_spill]]  ;;  %p1928_p4 = pnand %p1746_p13, %p2313_p9 }
 0x30d   : > { %p1929_p6 = pneg %p1928_p4 }
 0x311   : > { %s1616_s25 = sand.u32 1, %s2597_s7  }
 0x312   : > { %s1617_s26 = scalar_lea.sflag [#allocation5], %s1616_s25 }
 0x313   : > { %2171 = dma.done.wait (%p1929_p6), %s1617_s26, 512  }
 0x314   : > { %2173 = vsyncadd (%p1929_p6), %s1617_s26, 4294966784  ;;  %s27_s10 = sadd.s32 1, %s2196_s10   ;;  %s2599_s20 = sld [smem:[#allocation17_spill]] }
 0x315   : > { %p24_p10 = scmp.ge.s32.totalorder %s27_s10, 4   ;;  %s2600_s27 = smov %s2180_s28 }
 0x316   : > { %s2601_s28 = smov %s2184_s29  ;;  %s2602_s29 = smov %s2351_s16 }
 0x317   : > { %s2603_s30 = smov %s2192_s9  ;;  %26 = sbr.rel (!%p24_p10) target bundleno = 15 (0xf), region = 117 }
 0x31a   : > { %s2604_s9 = smov %s2599_s20 }
 0x31c   :  { %1623 = vsyncpa [#allocation4], 1 }
 0x31d   :  { %1625 = vsyncpa [#allocation4 + $0x1], 1 }
 0x31e   :  { %1626 = vsyncpa [#allocation7], 1 }
 0x31f   :  { %1628 = vsyncpa [#allocation7 + $0x1], 1 }
 0x320   :  { %1629 = vsyncpa [#allocation5], 1 }
 0x321   :  { %1631 = vsyncpa [#allocation5 + $0x1], 1 }

</bundles_post_ra>
